<compile_context>
chip_gen: v5e
topology: v5e:2x2
jax: 0.10.0
libtpu: 0.0.40
codegen_flags: <defaults>
</compile_context>

<pallas_src>
import jax
import jax.numpy as jnp
from jax.experimental import pallas as pl
from jax.experimental.pallas import tpu as pltpu


def _round_up(x, m):
    return ((x + m - 1) // m) * m


# ---------------------------------------------------------------------------
# Kernels
# ---------------------------------------------------------------------------
def _make_dense_kernel(n_hidden, hidden_dim):
    """Per-head dense path (H % 128 == 0): two dense HxH dots per hidden layer."""
    H = hidden_dim

    def kernel(obs_ref, act_ref, w_obs_ref, w_act_ref, *rest):
        if n_hidden > 0:
            w_hid_ref, w_out_ref, b_ref, b_out_ref, out_ref = rest
        else:
            w_out_ref, b_ref, b_out_ref, out_ref = rest

        obs = obs_ref[...].astype(jnp.bfloat16)
        act = act_ref[...].astype(jnp.bfloat16)
        # Layer 0, both heads fused along lanes -> (tile_b, 2H), f32 accumulate.
        h = (jnp.dot(obs, w_obs_ref[...], preferred_element_type=jnp.float32)
             + jnp.dot(act, w_act_ref[...], preferred_element_type=jnp.float32)
             + b_ref[0:1, :])
        h = jnp.maximum(h, 0.0)
        h1 = h[:, :H]          # lane-aligned split (H multiple of 128)
        h2 = h[:, H:]

        for i in range(n_hidden):
            b_row = b_ref[i + 1:i + 2, :]
            h1 = jnp.maximum(
                jnp.dot(h1.astype(jnp.bfloat16), w_hid_ref[i, 0, :, :],
                        preferred_element_type=jnp.float32) + b_row[:, :H], 0.0)
            h2 = jnp.maximum(
                jnp.dot(h2.astype(jnp.bfloat16), w_hid_ref[i, 1, :, :],
                        preferred_element_type=jnp.float32) + b_row[:, H:], 0.0)

        # Slim fused output: (tile_b, 128) lane-dense; q1 in col 0, q2 in col 1.
        out_ref[...] = (
            jnp.dot(h1.astype(jnp.bfloat16), w_out_ref[0, :, :],
                    preferred_element_type=jnp.float32)
            + jnp.dot(h2.astype(jnp.bfloat16), w_out_ref[1, :, :],
                      preferred_element_type=jnp.float32)
            + b_out_ref[...])

    return kernel


def _make_blockdiag_kernel(n_hidden):
    """Fused-lane path for small hidden dims (< 128): block-diag hidden mats."""

    def kernel(obs_ref, act_ref, w_obs_ref, w_act_ref, *rest):
        if n_hidden > 0:
            w_hid_ref, w_out_ref, b_ref, b_out_ref, out_ref = rest
        else:
            w_out_ref, b_ref, b_out_ref, out_ref = rest

        obs = obs_ref[...].astype(jnp.bfloat16)
        act = act_ref[...].astype(jnp.bfloat16)
        h = (jnp.dot(obs, w_obs_ref[...], preferred_element_type=jnp.float32)
             + jnp.dot(act, w_act_ref[...], preferred_element_type=jnp.float32)
             + b_ref[0:1, :])
        h = jnp.maximum(h, 0.0)
        for i in range(n_hidden):
            h = jnp.maximum(
                jnp.dot(h.astype(jnp.bfloat16), w_hid_ref[i, :, :],
                        preferred_element_type=jnp.float32)
                + b_ref[i + 1:i + 2, :], 0.0)
        out_ref[...] = (
            jnp.dot(h.astype(jnp.bfloat16), w_out_ref[...],
                    preferred_element_type=jnp.float32)
            + b_out_ref[...])

    return kernel


# ---------------------------------------------------------------------------
# Parameter packing (done once, at "module init" time)
# ---------------------------------------------------------------------------
def pack_double_q_params(q1_params, q2_params, obs_dim, *,
                         weight_dtype=jnp.bfloat16):
    """Fuse the two heads. q*_params[i] = (W_i (in, out), b_i (out,)), y = x @ W + b."""
    n_layers = len(q1_params)
    assert len(q2_params) == n_layers and n_layers >= 2, "need hidden_depth >= 1"
    H = q1_params[0][0].shape[1]
    in_dim = q1_params[0][0].shape[0]
    action_dim = in_dim - obs_dim
    assert action_dim > 0
    n_hidden = n_layers - 2
    dense = (H % 128 == 0)

    f32 = lambda a: jnp.asarray(a, jnp.float32)
    wcast = lambda a: jnp.asarray(a, weight_dtype)

    # Layer 0 fused along lanes: [W1_0 | W2_0] -> (in_dim, 2H); split into
    # obs/action parts so the kernel never slices across an (8,128) boundary
    # and never concatenates activations.
    w_in = jnp.concatenate([f32(q1_params[0][0]), f32(q2_params[0][0])], axis=1)
    w_obs = wcast(w_in[:obs_dim])
    w_act = wcast(w_in[obs_dim:])
    b_rows = [jnp.concatenate([f32(q1_params[0][1]).reshape(1, H),
                               f32(q2_params[0][1]).reshape(1, H)], axis=1)]

    # Hidden layers.
    mats = []
    for i in range(1, n_layers - 1):
        w1, b1 = q1_params[i]
        w2, b2 = q2_params[i]
        if dense:
            mats.append(jnp.stack([f32(w1), f32(w2)], axis=0))          # (2, H, H)
        else:
            top = jnp.concatenate([f32(w1), jnp.zeros((H, H), jnp.float32)], axis=1)
            bot = jnp.concatenate([jnp.zeros((H, H), jnp.float32), f32(w2)], axis=1)
            mats.append(jnp.concatenate([top, bot], axis=0))            # (2H, 2H)
        b_rows.append(jnp.concatenate([f32(b1).reshape(1, H),
                                       f32(b2).reshape(1, H)], axis=1))
    w_hid = wcast(jnp.stack(mats, axis=0)) if mats else None

    # Output layer: padded only to lane width (128); q1 -> col 0, q2 -> col 1.
    w1f = f32(q1_params[-1][0]).reshape(H)
    w2f = f32(q2_params[-1][0]).reshape(H)
    if dense:
        w_out = jnp.zeros((2, H, 128), jnp.float32)
        w_out = w_out.at[0, :, 0].set(w1f).at[1, :, 1].set(w2f)
    else:
        w_out = jnp.zeros((2 * H, 128), jnp.float32)
        w_out = w_out.at[:H, 0].set(w1f).at[H:, 1].set(w2f)
    w_out = wcast(w_out)
    b_out = jnp.zeros((1, 128), jnp.float32)
    b_out = b_out.at[0, 0].set(f32(q1_params[-1][1]).reshape(()))
    b_out = b_out.at[0, 1].set(f32(q2_params[-1][1]).reshape(()))

    return dict(dense=dense, obs_dim=obs_dim, action_dim=action_dim,
                hidden_dim=H, n_hidden=n_hidden,
                w_obs=w_obs, w_act=w_act, w_hid=w_hid, w_out=w_out,
                b_stack=jnp.concatenate(b_rows, axis=0),   # (n_layers-1, 2H) f32
                b_out=b_out)                               # (1, 128) f32


# ---------------------------------------------------------------------------
# Forward wrapper
# ---------------------------------------------------------------------------
def _padded_nbytes(a):
    shape = a.shape
    if len(shape) >= 2:
        rows = _round_up(shape[-2], 16)
        cols = _round_up(shape[-1], 128)
        lead = 1
        for d in shape[:-2]:
            lead *= d
        n = lead * rows * cols
    else:
        n = _round_up(shape[0] if shape else 1, 128)
    return n * a.dtype.itemsize


def double_q_critic_forward(obs, action, packed, *, block_b=512):
    """Fused DoubleQCritic forward. Returns (q1, q2), each (B, 1) float32."""
    assert obs.shape[0] == action.shape[0]
    batch = obs.shape[0]
    obs_dim, action_dim = packed["obs_dim"], packed["action_dim"]
    H, n_hidden = packed["hidden_dim"], packed["n_hidden"]
    assert obs.shape[1] == obs_dim and action.shape[1] == action_dim

    obs = obs.astype(jnp.float32)
    action = action.astype(jnp.float32)

    # --- batch tiling --------------------------------------------------------
    b8 = _round_up(max(batch, 8), 8)
    tile_b = min(block_b, b8)
    # Guarantee >= 2 grid steps when there is enough batch so the "parallel"
    # axis can shard across v7x's two TensorCores.
    if b8 >= 16 and b8 // max(tile_b, 1) < 2:
        tile_b = -(-b8 // 2)
    tile_b = _round_up(tile_b, 8)
    b_pad = _round_up(b8, tile_b)
    if b_pad != batch:
        pad = b_pad - batch
        obs = jnp.pad(obs, ((0, pad), (0, 0)))
        action = jnp.pad(action, ((0, pad), (0, 0)))
    grid = (b_pad // tile_b,)

    weight_arrays = [packed["w_obs"], packed["w_act"]]
    if n_hidden > 0:
        weight_arrays.append(packed["w_hid"])
    weight_arrays += [packed["w_out"], packed["b_stack"], packed["b_out"]]

    kernel = (_make_dense_kernel(n_hidden, H) if packed["dense"]
              else _make_blockdiag_kernel(n_hidden))

    # --- explicit scoped-VMEM budget -----------------------------------------
    w_bytes = sum(_padded_nbytes(a) for a in weight_arrays)
    act_bytes = (tile_b * _round_up(obs_dim, 128) * 4
                 + tile_b * _round_up(action_dim, 128) * 4
                 + tile_b * 128 * 4)
    h_bytes = tile_b * _round_up(2 * H, 128) * 4
    needed = 2 * w_bytes + 3 * act_bytes + 8 * h_bytes + (4 << 20)
    try:
        cap = int(pltpu.get_tpu_info().vmem_capacity_bytes)
    except Exception:
        cap = 64 << 20          # v7x per-TC physical VMEM (smallest of the fleet)
    vmem_limit = int(min(max(needed, 32 << 20), cap))

    def _run(single_buffer_weights):
        def wspec(shape):
            ndim = len(shape)
            idx = lambda i, _n=ndim: (0,) * _n
            if single_buffer_weights and hasattr(pl, "Buffered"):
                # Constant blocks never change across grid steps -> no double-buffer.
                return pl.BlockSpec(shape, idx, pipeline_mode=pl.Buffered(1))
            return pl.BlockSpec(shape, idx)

        in_specs = [
            pl.BlockSpec((tile_b, obs_dim), lambda i: (i, 0)),
            pl.BlockSpec((tile_b, action_dim), lambda i: (i, 0)),
        ] + [wspec(a.shape) for a in weight_arrays]

        out = pl.pallas_call(
            kernel,
            out_shape=jax.ShapeDtypeStruct((b_pad, 128), jnp.float32),
            grid_spec=pltpu.PrefetchScalarGridSpec(
                num_scalar_prefetch=0,
                grid=grid,
                in_specs=in_specs,
                out_specs=pl.BlockSpec((tile_b, 128), lambda i: (i, 0)),
            ),
            compiler_params=pltpu.CompilerParams(
                dimension_semantics=("parallel",),
                vmem_limit_bytes=vmem_limit),
        )(obs, action, *weight_arrays)
        return jax.block_until_ready(out)

    try:
        out = _run(True)     # weights single-buffered
    except Exception:
        out = _run(False)    # fall back to default pipelining if Buffered(1) rejected

    out = out[:batch]
    return out[:, 0:1], out[:, 1:2]


# ---------------------------------------------------------------------------
# Reference + demo
# ---------------------------------------------------------------------------
def _init_mlp_params(key, in_dim, hidden_dim, out_dim, hidden_depth):
    """Synthetic init of utils.mlp(in, hidden, out, depth), depth >= 1."""
    dims = [(in_dim, hidden_dim)]
    for _ in range(hidden_depth - 1):
        dims.append((hidden_dim, hidden_dim))
    dims.append((hidden_dim, out_dim))
    params = []
    for d_in, d_out in dims:
        key, kw, kb = jax.random.split(key, 3)
        scale = 1.0 / jnp.sqrt(jnp.float32(d_in))
        w = jax.random.normal(kw, (d_in, d_out), dtype=jnp.float32) * scale
        b = jax.random.normal(kb, (d_out,), dtype=jnp.float32) * 0.01
        params.append((w, b))
    return key, params


def _reference_forward(obs, action, q1_params, q2_params, *, emulate_bf16=False):
    x = jnp.concatenate([obs, action], axis=-1)

    def mlp(x, params):
        h = x
        for i, (w, b) in enumerate(params):
            if emulate_bf16:
                h = jnp.dot(h.astype(jnp.bfloat16), w.astype(jnp.bfloat16),
                            preferred_element_type=jnp.float32) + b
            else:
                h = jnp.dot(h, w) + b
            if i < len(params) - 1:
                h = jnp.maximum(h, 0.0)
        return h

    return mlp(x, q1_params), mlp(x, q2_params)


def _check(q1, q2, obs, act, p1, p2, batch):
    assert q1.shape == (batch, 1) and q2.shape == (batch, 1)
    # Strict check against a reference using the same numerics (bf16 weights,
    # f32 accumulation).
    r1, r2 = _reference_forward(obs, act, p1, p2, emulate_bf16=True)
    assert jnp.allclose(q1, r1, atol=5e-3, rtol=5e-3), float(jnp.max(jnp.abs(q1 - r1)))
    assert jnp.allclose(q2, r2, atol=5e-3, rtol=5e-3), float(jnp.max(jnp.abs(q2 - r2)))
    # Loose sanity check against the pure-f32 reference (bf16 weights in kernel).
    f1, f2 = _reference_forward(obs, act, p1, p2)
    assert jnp.allclose(q1, f1, atol=1e-1, rtol=1e-1)
    assert jnp.allclose(q2, f2, atol=1e-1, rtol=1e-1)


if __name__ == "__main__":
    key = jax.random.PRNGKey(0)
    obs_dim, action_dim, hidden_depth = 16, 8, 2

    # Case 1: tiny hidden_dim (< 128) -> block-diagonal fused path, single tile.
    batch, hidden_dim = 8, 32
    key, k_obs, k_act = jax.random.split(key, 3)
    obs = jax.random.normal(k_obs, (batch, obs_dim), dtype=jnp.float32)
    act = jax.random.normal(k_act, (batch, action_dim), dtype=jnp.float32)
    key, q1_p = _init_mlp_params(key, obs_dim + action_dim, hidden_dim, 1, hidden_depth)
    key, q2_p = _init_mlp_params(key, obs_dim + action_dim, hidden_dim, 1, hidden_depth)
    packed = pack_double_q_params(q1_p, q2_p, obs_dim)
    q1, q2 = double_q_critic_forward(obs, act, packed)
    jax.block_until_ready((q1, q2))
    _check(q1, q2, obs, act, q1_p, q2_p, batch)

    # Case 2: lane-aligned hidden_dim (128) -> dense per-head path, gridded batch
    # with tail padding (explicit small block_b -> 3 grid steps).
    batch2, hidden_dim2 = 20, 128
    key, k_obs2, k_act2 = jax.random.split(key, 3)
    obs2 = jax.random.normal(k_obs2, (batch2, obs_dim), dtype=jnp.float32)
    act2 = jax.random.normal(k_act2, (batch2, action_dim), dtype=jnp.float32)
    key, q1_p2 = _init_mlp_params(key, obs_dim + action_dim, hidden_dim2, 1, hidden_depth)
    key, q2_p2 = _init_mlp_params(key, obs_dim + action_dim, hidden_dim2, 1, hidden_depth)
    packed2 = pack_double_q_params(q1_p2, q2_p2, obs_dim)
    q1b, q2b = double_q_critic_forward(obs2, act2, packed2, block_b=8)
    jax.block_until_ready((q1b, q2b))
    _check(q1b, q2b, obs2, act2, q1_p2, q2_p2, batch2)

    # Case 3: default block_b -> batch auto-split into >= 2 grid steps (megacore).
    q1c, q2c = double_q_critic_forward(obs2, act2, packed2)
    jax.block_until_ready((q1c, q2c))
    _check(q1c, q2c, obs2, act2, q1_p2, q2_p2, batch2)

    # TODO(synk): self.outputs dict / log() histogram + param logging is host-side
    # bookkeeping with no kernel equivalent; only forward() is implemented.
    print("KERNEL_OK")
</pallas_src>

<mosaic_0001>
module attributes {stable_mosaic.version = 11 : i64} {
  func.func @kernel(%arg0: i32, %arg1: memref<8x16xf32, #tpu.memory_space<vmem>>, %arg2: memref<8x8xf32, #tpu.memory_space<vmem>>, %arg3: memref<16x64xbf16, #tpu.memory_space<vmem>>, %arg4: memref<8x64xbf16, #tpu.memory_space<vmem>>, %arg5: memref<1x64x64xbf16, #tpu.memory_space<vmem>>, %arg6: memref<64x128xbf16, #tpu.memory_space<vmem>>, %arg7: memref<2x64xf32, #tpu.memory_space<vmem>>, %arg8: memref<1x128xf32, #tpu.memory_space<vmem>>, %arg9: memref<8x128xf32, #tpu.memory_space<vmem>>) attributes {dimension_semantics = [#tpu.dimension_semantics<parallel>], iteration_bounds = array<i64: 1>, scalar_prefetch = 0 : i64, scratch_operands = 0 : i64, tpu.core_type = #tpu.core_type<tc>, window_params = [{transform_indices = @transform_0, window_bounds = array<i64: 8, 16>}, {transform_indices = @transform_1, window_bounds = array<i64: 8, 8>}, {pipeline_mode = #tpu.pipeline_mode<synchronous>, transform_indices = @transform_2, window_bounds = array<i64: 16, 64>}, {pipeline_mode = #tpu.pipeline_mode<synchronous>, transform_indices = @transform_3, window_bounds = array<i64: 8, 64>}, {pipeline_mode = #tpu.pipeline_mode<synchronous>, transform_indices = @transform_4, window_bounds = array<i64: 1, 64, 64>}, {pipeline_mode = #tpu.pipeline_mode<synchronous>, transform_indices = @transform_5, window_bounds = array<i64: 64, 128>}, {pipeline_mode = #tpu.pipeline_mode<synchronous>, transform_indices = @transform_6, window_bounds = array<i64: 2, 64>}, {pipeline_mode = #tpu.pipeline_mode<synchronous>, transform_indices = @transform_7, window_bounds = array<i64: 1, 128>}, {transform_indices = @transform_8, window_bounds = array<i64: 8, 128>}]} {
    %c0 = arith.constant 0 : index
    %c0_0 = arith.constant 0 : index
    %0 = vector.load %arg1[%c0, %c0_0] : memref<8x16xf32, #tpu.memory_space<vmem>>, vector<8x16xf32>
    %1 = arith.truncf %0 : vector<8x16xf32> to vector<8x16xbf16>
    %c0_1 = arith.constant 0 : index
    %c0_2 = arith.constant 0 : index
    %2 = vector.load %arg2[%c0_1, %c0_2] : memref<8x8xf32, #tpu.memory_space<vmem>>, vector<8x8xf32>
    %3 = arith.truncf %2 : vector<8x8xf32> to vector<8x8xbf16>
    %c0_3 = arith.constant 0 : index
    %c0_4 = arith.constant 0 : index
    %4 = vector.load %arg3[%c0_3, %c0_4] : memref<16x64xbf16, #tpu.memory_space<vmem>>, vector<16x64xbf16>
    %cst = arith.constant dense<0.000000e+00> : vector<8x64xf32>
    %5 = tpu.matmul %1, %4, %cst {dimension_numbers = #tpu.dot_dimension_numbers<[1], [0], [0], [1], [0, 0, 1, 1], [], []>} : vector<8x16xbf16>, vector<16x64xbf16>, vector<8x64xf32> -> vector<8x64xf32>
    %c0_5 = arith.constant 0 : index
    %c0_6 = arith.constant 0 : index
    %6 = vector.load %arg4[%c0_5, %c0_6] : memref<8x64xbf16, #tpu.memory_space<vmem>>, vector<8x64xbf16>
    %cst_7 = arith.constant dense<0.000000e+00> : vector<8x64xf32>
    %7 = tpu.matmul %3, %6, %cst_7 {dimension_numbers = #tpu.dot_dimension_numbers<[1], [0], [0], [1], [0, 0, 1, 1], [], []>} : vector<8x8xbf16>, vector<8x64xbf16>, vector<8x64xf32> -> vector<8x64xf32>
    %8 = arith.addf %5, %7 : vector<8x64xf32>
    %c0_8 = arith.constant 0 : index
    %c0_9 = arith.constant 0 : index
    %9 = vector.load %arg7[%c0_8, %c0_9] : memref<2x64xf32, #tpu.memory_space<vmem>>, vector<1x64xf32>
    %10 = vector.broadcast %9 : vector<1x64xf32> to vector<8x64xf32>
    %11 = arith.addf %8, %10 : vector<8x64xf32>
    %cst_10 = arith.constant 0.000000e+00 : f32
    %12 = vector.broadcast %cst_10 : f32 to vector<8x64xf32>
    %13 = arith.maximumf %11, %12 : vector<8x64xf32>
    %14 = arith.truncf %13 : vector<8x64xf32> to vector<8x64xbf16>
    %c0_11 = arith.constant 0 : index
    %c0_12 = arith.constant 0 : index
    %c0_13 = arith.constant 0 : index
    %15 = vector.load %arg5[%c0_11, %c0_12, %c0_13] : memref<1x64x64xbf16, #tpu.memory_space<vmem>>, vector<1x64x64xbf16>
    %16 = vector.shape_cast %15 : vector<1x64x64xbf16> to vector<64x64xbf16>
    %cst_14 = arith.constant dense<0.000000e+00> : vector<8x64xf32>
    %17 = tpu.matmul %14, %16, %cst_14 {dimension_numbers = #tpu.dot_dimension_numbers<[1], [0], [0], [1], [0, 0, 1, 1], [], []>} : vector<8x64xbf16>, vector<64x64xbf16>, vector<8x64xf32> -> vector<8x64xf32>
    %c1 = arith.constant 1 : index
    %c0_15 = arith.constant 0 : index
    %18 = vector.load %arg7[%c1, %c0_15] : memref<2x64xf32, #tpu.memory_space<vmem>>, vector<1x64xf32>
    %19 = vector.broadcast %18 : vector<1x64xf32> to vector<8x64xf32>
    %20 = arith.addf %17, %19 : vector<8x64xf32>
    %cst_16 = arith.constant 0.000000e+00 : f32
    %21 = vector.broadcast %cst_16 : f32 to vector<8x64xf32>
    %22 = arith.maximumf %20, %21 : vector<8x64xf32>
    %23 = arith.truncf %22 : vector<8x64xf32> to vector<8x64xbf16>
    %c0_17 = arith.constant 0 : index
    %c0_18 = arith.constant 0 : index
    %24 = vector.load %arg6[%c0_17, %c0_18] : memref<64x128xbf16, #tpu.memory_space<vmem>>, vector<64x128xbf16>
    %cst_19 = arith.constant dense<0.000000e+00> : vector<8x128xf32>
    %25 = tpu.matmul %23, %24, %cst_19 {dimension_numbers = #tpu.dot_dimension_numbers<[1], [0], [0], [1], [0, 0, 1, 1], [], []>} : vector<8x64xbf16>, vector<64x128xbf16>, vector<8x128xf32> -> vector<8x128xf32>
    %c0_20 = arith.constant 0 : index
    %c0_21 = arith.constant 0 : index
    %26 = vector.load %arg8[%c0_20, %c0_21] : memref<1x128xf32, #tpu.memory_space<vmem>>, vector<1x128xf32>
    %27 = vector.broadcast %26 : vector<1x128xf32> to vector<8x128xf32>
    %28 = arith.addf %25, %27 : vector<8x128xf32>
    %c0_22 = arith.constant 0 : index
    %c0_23 = arith.constant 0 : index
    %29 = vector.load %arg9[%c0_22, %c0_23] : memref<8x128xf32, #tpu.memory_space<vmem>>, vector<8x128xf32>
    tpu.vector_store %arg9[%c0_22, %c0_23], %28 {strides = array<i32>} : memref<8x128xf32, #tpu.memory_space<vmem>>, vector<8x128xf32>,
    return
  }
  func.func @transform_0(%arg0: i32) -> (i32, i32) {
    %c0_i32 = arith.constant 0 : i32
    %c0_i32_0 = arith.constant 0 : i32
    return %arg0, %c0_i32 : i32, i32
  }
  func.func @transform_1(%arg0: i32) -> (i32, i32) {
    %c0_i32 = arith.constant 0 : i32
    %c0_i32_0 = arith.constant 0 : i32
    return %arg0, %c0_i32 : i32, i32
  }
  func.func @transform_2(%arg0: i32) -> (i32, i32) {
    %c0_i32 = arith.constant 0 : i32
    %c0_i32_0 = arith.constant 0 : i32
    %c0_i32_1 = arith.constant 0 : i32
    return %c0_i32, %c0_i32_0 : i32, i32
  }
  func.func @transform_3(%arg0: i32) -> (i32, i32) {
    %c0_i32 = arith.constant 0 : i32
    %c0_i32_0 = arith.constant 0 : i32
    %c0_i32_1 = arith.constant 0 : i32
    return %c0_i32, %c0_i32_0 : i32, i32
  }
  func.func @transform_4(%arg0: i32) -> (i32, i32, i32) {
    %c0_i32 = arith.constant 0 : i32
    %c0_i32_0 = arith.constant 0 : i32
    %c0_i32_1 = arith.constant 0 : i32
    %c0_i32_2 = arith.constant 0 : i32
    return %c0_i32, %c0_i32_0, %c0_i32_1 : i32, i32, i32
  }
  func.func @transform_5(%arg0: i32) -> (i32, i32) {
    %c0_i32 = arith.constant 0 : i32
    %c0_i32_0 = arith.constant 0 : i32
    %c0_i32_1 = arith.constant 0 : i32
    return %c0_i32, %c0_i32_0 : i32, i32
  }
  func.func @transform_6(%arg0: i32) -> (i32, i32) {
    %c0_i32 = arith.constant 0 : i32
    %c0_i32_0 = arith.constant 0 : i32
    %c0_i32_1 = arith.constant 0 : i32
    return %c0_i32, %c0_i32_0 : i32, i32
  }
  func.func @transform_7(%arg0: i32) -> (i32, i32) {
    %c0_i32 = arith.constant 0 : i32
    %c0_i32_0 = arith.constant 0 : i32
    %c0_i32_1 = arith.constant 0 : i32
    return %c0_i32, %c0_i32_0 : i32, i32
  }
  func.func @transform_8(%arg0: i32) -> (i32, i32) {
    %c0_i32 = arith.constant 0 : i32
    %c0_i32_0 = arith.constant 0 : i32
    return %arg0, %c0_i32 : i32, i32
  }
}

module attributes {stable_mosaic.version = 11 : i64} {
  func.func @kernel(%arg0: i32, %arg1: memref<8x16xf32, #tpu.memory_space<vmem>>, %arg2: memref<8x8xf32, #tpu.memory_space<vmem>>, %arg3: memref<16x64xbf16, #tpu.memory_space<vmem>>, %arg4: memref<8x64xbf16, #tpu.memory_space<vmem>>, %arg5: memref<1x64x64xbf16, #tpu.memory_space<vmem>>, %arg6: memref<64x128xbf16, #tpu.memory_space<vmem>>, %arg7: memref<2x64xf32, #tpu.memory_space<vmem>>, %arg8: memref<1x128xf32, #tpu.memory_space<vmem>>, %arg9: memref<8x128xf32, #tpu.memory_space<vmem>>) attributes {dimension_semantics = [#tpu.dimension_semantics<parallel>], iteration_bounds = array<i64: 1>, scalar_prefetch = 0 : i64, scratch_operands = 0 : i64, tpu.core_type = #tpu.core_type<tc>, window_params = [{transform_indices = @transform_0, window_bounds = array<i64: 8, 16>}, {transform_indices = @transform_1, window_bounds = array<i64: 8, 8>}, {pipeline_mode = #tpu.pipeline_mode<synchronous>, transform_indices = @transform_2, window_bounds = array<i64: 16, 64>}, {pipeline_mode = #tpu.pipeline_mode<synchronous>, transform_indices = @transform_3, window_bounds = array<i64: 8, 64>}, {pipeline_mode = #tpu.pipeline_mode<synchronous>, transform_indices = @transform_4, window_bounds = array<i64: 1, 64, 64>}, {pipeline_mode = #tpu.pipeline_mode<synchronous>, transform_indices = @transform_5, window_bounds = array<i64: 64, 128>}, {pipeline_mode = #tpu.pipeline_mode<synchronous>, transform_indices = @transform_6, window_bounds = array<i64: 2, 64>}, {pipeline_mode = #tpu.pipeline_mode<synchronous>, transform_indices = @transform_7, window_bounds = array<i64: 1, 128>}, {transform_indices = @transform_8, window_bounds = array<i64: 8, 128>}]} {
    %c0 = arith.constant 0 : index
    %c0_0 = arith.constant 0 : index
    %0 = vector.load %arg1[%c0, %c0_0] : memref<8x16xf32, #tpu.memory_space<vmem>>, vector<8x16xf32>
    %1 = arith.truncf %0 : vector<8x16xf32> to vector<8x16xbf16>
    %c0_1 = arith.constant 0 : index
    %c0_2 = arith.constant 0 : index
    %2 = vector.load %arg2[%c0_1, %c0_2] : memref<8x8xf32, #tpu.memory_space<vmem>>, vector<8x8xf32>
    %3 = arith.truncf %2 : vector<8x8xf32> to vector<8x8xbf16>
    %c0_3 = arith.constant 0 : index
    %c0_4 = arith.constant 0 : index
    %4 = vector.load %arg3[%c0_3, %c0_4] : memref<16x64xbf16, #tpu.memory_space<vmem>>, vector<16x64xbf16>
    %cst = arith.constant dense<0.000000e+00> : vector<8x64xf32>
    %5 = tpu.matmul %1, %4, %cst {dimension_numbers = #tpu.dot_dimension_numbers<[1], [0], [0], [1], [0, 0, 1, 1], [], []>} : vector<8x16xbf16>, vector<16x64xbf16>, vector<8x64xf32> -> vector<8x64xf32>
    %c0_5 = arith.constant 0 : index
    %c0_6 = arith.constant 0 : index
    %6 = vector.load %arg4[%c0_5, %c0_6] : memref<8x64xbf16, #tpu.memory_space<vmem>>, vector<8x64xbf16>
    %cst_7 = arith.constant dense<0.000000e+00> : vector<8x64xf32>
    %7 = tpu.matmul %3, %6, %cst_7 {dimension_numbers = #tpu.dot_dimension_numbers<[1], [0], [0], [1], [0, 0, 1, 1], [], []>} : vector<8x8xbf16>, vector<8x64xbf16>, vector<8x64xf32> -> vector<8x64xf32>
    %8 = arith.addf %5, %7 : vector<8x64xf32>
    %c0_8 = arith.constant 0 : index
    %c0_9 = arith.constant 0 : index
    %9 = vector.load %arg7[%c0_8, %c0_9] : memref<2x64xf32, #tpu.memory_space<vmem>>, vector<1x64xf32>
    %10 = vector.broadcast %9 : vector<1x64xf32> to vector<8x64xf32>
    %11 = arith.addf %8, %10 : vector<8x64xf32>
    %cst_10 = arith.constant 0.000000e+00 : f32
    %12 = vector.broadcast %cst_10 : f32 to vector<8x64xf32>
    %13 = arith.maximumf %11, %12 : vector<8x64xf32>
    %14 = arith.truncf %13 : vector<8x64xf32> to vector<8x64xbf16>
    %c0_11 = arith.constant 0 : index
    %c0_12 = arith.constant 0 : index
    %c0_13 = arith.constant 0 : index
    %15 = vector.load %arg5[%c0_11, %c0_12, %c0_13] : memref<1x64x64xbf16, #tpu.memory_space<vmem>>, vector<1x64x64xbf16>
    %16 = vector.shape_cast %15 : vector<1x64x64xbf16> to vector<64x64xbf16>
    %cst_14 = arith.constant dense<0.000000e+00> : vector<8x64xf32>
    %17 = tpu.matmul %14, %16, %cst_14 {dimension_numbers = #tpu.dot_dimension_numbers<[1], [0], [0], [1], [0, 0, 1, 1], [], []>} : vector<8x64xbf16>, vector<64x64xbf16>, vector<8x64xf32> -> vector<8x64xf32>
    %c1 = arith.constant 1 : index
    %c0_15 = arith.constant 0 : index
    %18 = vector.load %arg7[%c1, %c0_15] : memref<2x64xf32, #tpu.memory_space<vmem>>, vector<1x64xf32>
    %19 = vector.broadcast %18 : vector<1x64xf32> to vector<8x64xf32>
    %20 = arith.addf %17, %19 : vector<8x64xf32>
    %cst_16 = arith.constant 0.000000e+00 : f32
    %21 = vector.broadcast %cst_16 : f32 to vector<8x64xf32>
    %22 = arith.maximumf %20, %21 : vector<8x64xf32>
    %23 = arith.truncf %22 : vector<8x64xf32> to vector<8x64xbf16>
    %c0_17 = arith.constant 0 : index
    %c0_18 = arith.constant 0 : index
    %24 = vector.load %arg6[%c0_17, %c0_18] : memref<64x128xbf16, #tpu.memory_space<vmem>>, vector<64x128xbf16>
    %cst_19 = arith.constant dense<0.000000e+00> : vector<8x128xf32>
    %25 = tpu.matmul %23, %24, %cst_19 {dimension_numbers = #tpu.dot_dimension_numbers<[1], [0], [0], [1], [0, 0, 1, 1], [], []>} : vector<8x64xbf16>, vector<64x128xbf16>, vector<8x128xf32> -> vector<8x128xf32>
    %c0_20 = arith.constant 0 : index
    %c0_21 = arith.constant 0 : index
    %26 = vector.load %arg8[%c0_20, %c0_21] : memref<1x128xf32, #tpu.memory_space<vmem>>, vector<1x128xf32>
    %27 = vector.broadcast %26 : vector<1x128xf32> to vector<8x128xf32>
    %28 = arith.addf %25, %27 : vector<8x128xf32>
    %c0_22 = arith.constant 0 : index
    %c0_23 = arith.constant 0 : index
    %29 = vector.load %arg9[%c0_22, %c0_23] : memref<8x128xf32, #tpu.memory_space<vmem>>, vector<8x128xf32>
    tpu.vector_store %arg9[%c0_22, %c0_23], %28 {strides = array<i32>} : memref<8x128xf32, #tpu.memory_space<vmem>>, vector<8x128xf32>,
    return
  }
  func.func @transform_0(%arg0: i32) -> (i32, i32) {
    %c0_i32 = arith.constant 0 : i32
    %c0_i32_0 = arith.constant 0 : i32
    return %arg0, %c0_i32 : i32, i32
  }
  func.func @transform_1(%arg0: i32) -> (i32, i32) {
    %c0_i32 = arith.constant 0 : i32
    %c0_i32_0 = arith.constant 0 : i32
    return %arg0, %c0_i32 : i32, i32
  }
  func.func @transform_2(%arg0: i32) -> (i32, i32) {
    %c0_i32 = arith.constant 0 : i32
    %c0_i32_0 = arith.constant 0 : i32
    %c0_i32_1 = arith.constant 0 : i32
    return %c0_i32, %c0_i32_0 : i32, i32
  }
  func.func @transform_3(%arg0: i32) -> (i32, i32) {
    %c0_i32 = arith.constant 0 : i32
    %c0_i32_0 = arith.constant 0 : i32
    %c0_i32_1 = arith.constant 0 : i32
    return %c0_i32, %c0_i32_0 : i32, i32
  }
  func.func @transform_4(%arg0: i32) -> (i32, i32, i32) {
    %c0_i32 = arith.constant 0 : i32
    %c0_i32_0 = arith.constant 0 : i32
    %c0_i32_1 = arith.constant 0 : i32
    %c0_i32_2 = arith.constant 0 : i32
    return %c0_i32, %c0_i32_0, %c0_i32_1 : i32, i32, i32
  }
  func.func @transform_5(%arg0: i32) -> (i32, i32) {
    %c0_i32 = arith.constant 0 : i32
    %c0_i32_0 = arith.constant 0 : i32
    %c0_i32_1 = arith.constant 0 : i32
    return %c0_i32, %c0_i32_0 : i32, i32
  }
  func.func @transform_6(%arg0: i32) -> (i32, i32) {
    %c0_i32 = arith.constant 0 : i32
    %c0_i32_0 = arith.constant 0 : i32
    %c0_i32_1 = arith.constant 0 : i32
    return %c0_i32, %c0_i32_0 : i32, i32
  }
  func.func @transform_7(%arg0: i32) -> (i32, i32) {
    %c0_i32 = arith.constant 0 : i32
    %c0_i32_0 = arith.constant 0 : i32
    %c0_i32_1 = arith.constant 0 : i32
    return %c0_i32, %c0_i32_0 : i32, i32
  }
  func.func @transform_8(%arg0: i32) -> (i32, i32) {
    %c0_i32 = arith.constant 0 : i32
    %c0_i32_0 = arith.constant 0 : i32
    return %arg0, %c0_i32 : i32, i32
  }
}

</mosaic_0001>

<bundles_post_ra>
// kernel: tpu_custom_call.1
= control target key start
LH: loop header
LB: loop body
LE: loop exit
PB: predicated region body
PF: predicated region fallthrough
CT: control target
= control target key end

     0   :  { %13 = vsyncpa [#allocation3], 0  ;;  %s624_s0 = inlined_call_operand.hbm [shape: f32[8,16], index: 0, kind: input, shape index: {}]   ;;  %s625_s1 = inlined_call_operand.hbm [shape: f32[8,8], index: 1, kind: input, shape index: {}]   ;;  %s626_s2 = inlined_call_operand.hbm [shape: bf16[16,64], index: 2, kind: input, shape index: {}]   ;;  %s627_s3 = inlined_call_operand.hbm [shape: bf16[8,64], index: 3, kind: input, shape index: {}]   ;;  %s628_s4 = inlined_call_operand.hbm [shape: bf16[1,64,64], index: 4, kind: input, shape index: {}]   ;;  %s629_s5 = inlined_call_operand.hbm [shape: bf16[64,128], index: 5, kind: input, shape index: {}]   ;;  %s630_s6 = inlined_call_operand.vmem [shape: f32[2,64], index: 6, kind: input, shape index: {}]   ;;  %s631_s7 = inlined_call_operand.vmem [shape: f32[1,128], index: 7, kind: input, shape index: {}]   ;;  %s632_s8 = inlined_call_operand.hbm [shape: f32[8,128], index: 8, kind: output, shape index: {}]  }
   0x1   :  { %14 = vsyncpa [#allocation6], 0 }
   0x2   :  { %15 = vsyncpa [#allocation9], 0 }
   0x3   :  { %16 = vsyncpa [#allocation12], 0  ;;  %s34_s29 = sshll.u32 %s625_s1, 4  ;;  %s35_s29 = int_to_ptr.hbm [resolvable:$true] %s34_s29 }
   0x4   :  { %17 = vsyncpa [#allocation4], 0  ;;  %s540_s30 = smov [#allocation5]   ;;  %s58_s12 = sshll.u32 %s627_s3, 4  ;;  %s59_s12 = int_to_ptr.hbm [resolvable:$true] %s58_s12 }
   0x5   :  { %s36_s9 = sshll.u32 %s540_s30, 4  ;;  %s541_s13 = smov [#allocation8]   ;;  %s37_s9 = int_to_ptr.vmem [resolvable:$true] %s36_s9 }
   0x6   :  { %39 = dma.hbm_to_vmem [thread:$0]  %s35_s29, 128, %s37_s9, [#allocation6]  }
   0x7   :  { %s60_s14 = sshll.u32 %s541_s13, 4  ;;  %s23_s17 = sshll.u32 %s624_s0, 4  ;;  %s61_s14 = int_to_ptr.vmem [resolvable:$true] %s60_s14  ;;  %s24_s17 = int_to_ptr.hbm [resolvable:$true] %s23_s17 }
   0x8   :  { %63 = dma.hbm_to_vmem [thread:$0]  %s59_s12, 64, %s61_s14, [#allocation9]  }
   0x9   :  { %s44_s19 = sshll.u32 %s626_s2, 4  ;;  %s542_s20 = smov [#allocation2]   ;;  %s45_s19 = int_to_ptr.hbm [resolvable:$true] %s44_s19 }
   0xa   :  { %s25_s21 = sshll.u32 %s542_s20, 4  ;;  %s543_s3 = smov [#allocation7]   ;;  %s26_s21 = int_to_ptr.vmem [resolvable:$true] %s25_s21 }
   0xb   :  { %28 = dma.hbm_to_vmem [thread:$0]  %s24_s17, 128, %s26_s21, [#allocation3]  }
   0xc   :  { %s46_s22 = sshll.u32 %s543_s3, 4  ;;  %s544_s23 = smov 64   ;;  %s47_s22 = int_to_ptr.vmem [resolvable:$true] %s46_s22 }
   0xd   :  { %s545_s24 = smov 4   ;;  %s68_s26 = sshll.u32 %s628_s4, 4  ;;  %s69_s26 = int_to_ptr.hbm [resolvable:$true] %s68_s26 }
   0xe   :  { %52 = dma.hbm_to_vmem [thread:$0]  %s45_s19, 128, %s47_s22, [#allocation6], %s544_s23, %s544_s23, %s545_s24  }
   0xf   :  { %s546_s27 = smov [#allocation10]   ;;  %s81_s30 = sshll.u32 %s629_s5, 4  ;;  %s82_s30 = int_to_ptr.hbm [resolvable:$true] %s81_s30 }
  0x10   :  { %s70_s28 = sshll.u32 %s546_s27, 4  ;;  %s547_s9 = smov [#allocation11]   ;;  %s71_s28 = int_to_ptr.vmem [resolvable:$true] %s70_s28 }
  0x11   :  { %76 = dma.hbm_to_vmem [thread:$0]  %s69_s26, 512, %s71_s28, [#allocation9], %s544_s23, %s544_s23, %s545_s24  }
  0x12   :  { %s83_s10 = sshll.u32 %s547_s9, 4  ;;  %s84_s10 = int_to_ptr.vmem [resolvable:$true] %s83_s10 }
  0x13   :  { %89 = dma.hbm_to_vmem [thread:$0]  %s82_s30, 512, %s84_s10, [#allocation12], %s544_s23, %s544_s23, %s545_s24  }
  0x14   :  { %530 = dma.done.wait [#allocation3], 128  }
  0x15   :  { %531 = vsyncadd [#allocation3], 4294967168 }
  0x16   :  { %532 = dma.done.wait [#allocation6], 256  }
  0x17   :  { %533 = vsyncadd [#allocation6], 4294967040 }
  0x18   :  { %534 = dma.done.wait [#allocation9], 576  }
  0x19   :  { %535 = vsyncadd [#allocation9], 4294966720 }
  0x1a   :  { %536 = dma.done.wait [#allocation12], 512  }
  0x1b   :  { %537 = vsyncadd [#allocation12], 4294966784  ;;  %vm130_vm0 = vcmask 1043456   ;;  %v125_v0 = vld [vmem:[#allocation8] sm:$0xf]  ;;  %v341_v1 = vld [vmem:[#allocation7] sm:$0xff] }
  0x1c   :  { %v121_v2 = vld [vmem:[#allocation5] sm:$0xff]  ;;  %v132_v3 = vsel %vm130_vm0, %v125_v0, 0  ;;  %vm126_vm1 = vcmask 64512   ;;  %v119_v5 = vld [vmem:[#allocation2] sm:$0xff]  ;;  %vm153_vm2 = vcmask 130048   ;;  %v345_v6 = vld [vmem:[#allocation10 + $0x18] sm:$0xff]  ;;  %164 = vmatpush.bf16.msra.mxu1 %v341_v1 }
  0x1d   :  { %v122_v4 = vpack.c.bf16 %v121_v2, %v121_v2  ;;  %141 = vmatpush.bf16.msra.mxu0 %v132_v3  ;;  %v120_v7 = vpack.c.bf16 %v119_v5, %v119_v5  ;;  %217 = vmatpush.bf16.msra.mxu2 %v345_v6  ;;  %v344_v8 = vld [vmem:[#allocation10 + $0x10] sm:$0xff]  ;;  %v343_v9 = vld [vmem:[#allocation10 + $0x8] sm:$0xff]  ;;  %v342_v10 = vld [vmem:[#allocation10] sm:$0xff]  ;;  %vm209_vm3 = vcmask 523264   ;;  %s548_s15 = smov [#allocation13]   ;;  %s288_s18 = sshll.u32 %s632_s8, 4  ;;  %s289_s18 = int_to_ptr.hbm [resolvable:$true] %s288_s18 }
  0x1e   :  { %v349_v11 = vld [vmem:[#allocation11 + $0x18] sm:$0xff]  ;;  %v348_v12 = vld [vmem:[#allocation11 + $0x10] sm:$0xff]  ;;  %v359_v13 = vld [vmem:[%s630_s6] ss:$0 sm:$0xff]  ;;  %s286_s16 = sshll.u32 %s548_s15, 4  ;;  %s287_s16 = int_to_ptr.vmem [resolvable:$true] %s286_s16 }
  0x1f   :  { %306 = vmatmul.msk.bf16.vlgmr.msra.gmra.mxu1 %vm153_vm2, %v120_v7  ;;  %271 = vmatpush.bf16.msra.mxu3 %v349_v11  ;;  %v347_v22 = vld [vmem:[#allocation11 + $0x8] sm:$0xff]  ;;  %v346_v23 = vld [vmem:[#allocation11] sm:$0xff] }
  0x20   :  { %301 = vmatmul.msk.bf16.vlgmr.msra.gmra.mxu0 %vm126_vm1, %v122_v4  ;;  %v360_v24 = vld [vmem:[%s630_s6 + $0x1] ss:$0 sm:$0xff]  ;;  %v361_v30 = vld [vmem:[%s631_s7] ss:$0 sm:$0xff] }
  0x21   :  { %218 = vmatpush.bf16.msra.mxu2 %v344_v8 }
  0x23   :  { %272 = vmatpush.bf16.msra.mxu3 %v348_v12 }
  0x25   :  { %219 = vmatpush.bf16.msra.mxu2 %v343_v9 }
  0x27   :  { %273 = vmatpush.bf16.msra.mxu3 %v347_v22 }
  0x29   :  { %220 = vmatpush.bf16.msra.mxu2 %v342_v10 }
  0x2b   :  { %274 = vmatpush.bf16.msra.mxu3 %v346_v23 }
  0x9c   :  { %v166_v15 = vpop.f32.mrf.mxu1 }
  0x9d   :  { %v143_v14 = vpop.f32.mrf.mxu0 }
  0x9e   :  { %v167_v16 = vadd.f32 %v166_v15, %v143_v14 }
  0xa0   :  { %v172_v17 = vadd.f32 %v359_v13, %v167_v16 }
  0xa2   :  { %v173_v18 = vmax.f32 %v172_v17, 0.0 }
  0xa4   :  { %v174_v19 = vpack.c.bf16 %v173_v18, %v173_v18  ;;  %v168_v21 = vpop.f32.mrf.mxu1 }
  0xa5   :  { %v145_v20 = vpop.f32.mrf.mxu0 }
  0xa6   :  { %323 = vmatmul.msk.bf16.vlgmr.msra.gmra.mxu2 %vm209_vm3, %v174_v19 }
 0x129   :  { %v222_v25 = vpop.f32.mrf.mxu2 }
 0x12a   :  { %v223_v26 = vadd.f32 %v360_v24, %v222_v25 }
 0x12c   :  { %v226_v27 = vmax.f32 %v223_v26, 0.0 }
 0x12e   :  { %v227_v28 = vpack.c.bf16 %v226_v27, %v226_v27 }
 0x130   :  { %340 = vmatmul.msk.bf16.vlgmr.msra.gmra.mxu3 %vm209_vm3, %v227_v28 }
 0x131   :  { %v224_v29 = vpop.f32.mrf.mxu2 }
 0x1b3   :  { %v276_v31 = vpop.f32.mrf.mxu3 }
 0x1b4   :  { %v277_v32 = vadd.f32 %v361_v30, %v276_v31 }
 0x1b6   :  { %280 = vst [vmem:[#allocation13] sm:$0xff] %v277_v32 }
 0x1b7   :  { %291 = dma.vmem_to_hbm [thread:$0]  %s287_s16, 128, %s289_s18, [#allocation4]  }
 0x1bb   :  { %v278_v33 = vpop.f32.mrf.mxu3 }
 0x1bc   :  { %538 = dma.done.wait [#allocation4], 128  }
 0x1bd   :  { %539 = vsyncadd [#allocation4], 4294967168 }
 0x1be   :  { %296 = vsyncpa [#allocation3], 1 }
 0x1bf   :  { %297 = vsyncpa [#allocation6], 1 }
 0x1c0   :  { %298 = vsyncpa [#allocation9], 1 }
 0x1c1   :  { %299 = vsyncpa [#allocation12], 1 }
 0x1c2   :  { %300 = vsyncpa [#allocation4], 1 }

// kernel: tpu_custom_call.1
= control target key start
LH: loop header
LB: loop body
LE: loop exit
PB: predicated region body
PF: predicated region fallthrough
CT: control target
= control target key end

     0   :  { %13 = vsyncpa [#allocation3], 0  ;;  %s624_s0 = inlined_call_operand.hbm [shape: f32[8,16], index: 0, kind: input, shape index: {}]   ;;  %s625_s1 = inlined_call_operand.hbm [shape: f32[8,8], index: 1, kind: input, shape index: {}]   ;;  %s626_s2 = inlined_call_operand.hbm [shape: bf16[16,64], index: 2, kind: input, shape index: {}]   ;;  %s627_s3 = inlined_call_operand.hbm [shape: bf16[8,64], index: 3, kind: input, shape index: {}]   ;;  %s628_s4 = inlined_call_operand.hbm [shape: bf16[1,64,64], index: 4, kind: input, shape index: {}]   ;;  %s629_s5 = inlined_call_operand.hbm [shape: bf16[64,128], index: 5, kind: input, shape index: {}]   ;;  %s630_s6 = inlined_call_operand.vmem [shape: f32[2,64], index: 6, kind: input, shape index: {}]   ;;  %s631_s7 = inlined_call_operand.vmem [shape: f32[1,128], index: 7, kind: input, shape index: {}]   ;;  %s632_s8 = inlined_call_operand.hbm [shape: f32[8,128], index: 8, kind: output, shape index: {}]  }
   0x1   :  { %14 = vsyncpa [#allocation6], 0 }
   0x2   :  { %15 = vsyncpa [#allocation9], 0 }
   0x3   :  { %16 = vsyncpa [#allocation12], 0  ;;  %s34_s29 = sshll.u32 %s625_s1, 4  ;;  %s35_s29 = int_to_ptr.hbm [resolvable:$true] %s34_s29 }
   0x4   :  { %17 = vsyncpa [#allocation4], 0  ;;  %s540_s30 = smov [#allocation5]   ;;  %s58_s12 = sshll.u32 %s627_s3, 4  ;;  %s59_s12 = int_to_ptr.hbm [resolvable:$true] %s58_s12 }
   0x5   :  { %s36_s9 = sshll.u32 %s540_s30, 4  ;;  %s541_s13 = smov [#allocation8]   ;;  %s37_s9 = int_to_ptr.vmem [resolvable:$true] %s36_s9 }
   0x6   :  { %39 = dma.hbm_to_vmem [thread:$0]  %s35_s29, 128, %s37_s9, [#allocation6]  }
   0x7   :  { %s60_s14 = sshll.u32 %s541_s13, 4  ;;  %s23_s17 = sshll.u32 %s624_s0, 4  ;;  %s61_s14 = int_to_ptr.vmem [resolvable:$true] %s60_s14  ;;  %s24_s17 = int_to_ptr.hbm [resolvable:$true] %s23_s17 }
   0x8   :  { %63 = dma.hbm_to_vmem [thread:$0]  %s59_s12, 64, %s61_s14, [#allocation9]  }
   0x9   :  { %s44_s19 = sshll.u32 %s626_s2, 4  ;;  %s542_s20 = smov [#allocation2]   ;;  %s45_s19 = int_to_ptr.hbm [resolvable:$true] %s44_s19 }
   0xa   :  { %s25_s21 = sshll.u32 %s542_s20, 4  ;;  %s543_s3 = smov [#allocation7]   ;;  %s26_s21 = int_to_ptr.vmem [resolvable:$true] %s25_s21 }
   0xb   :  { %28 = dma.hbm_to_vmem [thread:$0]  %s24_s17, 128, %s26_s21, [#allocation3]  }
   0xc   :  { %s46_s22 = sshll.u32 %s543_s3, 4  ;;  %s544_s23 = smov 64   ;;  %s47_s22 = int_to_ptr.vmem [resolvable:$true] %s46_s22 }
   0xd   :  { %s545_s24 = smov 4   ;;  %s68_s26 = sshll.u32 %s628_s4, 4  ;;  %s69_s26 = int_to_ptr.hbm [resolvable:$true] %s68_s26 }
   0xe   :  { %52 = dma.hbm_to_vmem [thread:$0]  %s45_s19, 128, %s47_s22, [#allocation6], %s544_s23, %s544_s23, %s545_s24  }
   0xf   :  { %s546_s27 = smov [#allocation10]   ;;  %s81_s30 = sshll.u32 %s629_s5, 4  ;;  %s82_s30 = int_to_ptr.hbm [resolvable:$true] %s81_s30 }
  0x10   :  { %s70_s28 = sshll.u32 %s546_s27, 4  ;;  %s547_s9 = smov [#allocation11]   ;;  %s71_s28 = int_to_ptr.vmem [resolvable:$true] %s70_s28 }
  0x11   :  { %76 = dma.hbm_to_vmem [thread:$0]  %s69_s26, 512, %s71_s28, [#allocation9], %s544_s23, %s544_s23, %s545_s24  }
  0x12   :  { %s83_s10 = sshll.u32 %s547_s9, 4  ;;  %s84_s10 = int_to_ptr.vmem [resolvable:$true] %s83_s10 }
  0x13   :  { %89 = dma.hbm_to_vmem [thread:$0]  %s82_s30, 512, %s84_s10, [#allocation12], %s544_s23, %s544_s23, %s545_s24  }
  0x14   :  { %530 = dma.done.wait [#allocation3], 128  }
  0x15   :  { %531 = vsyncadd [#allocation3], 4294967168 }
  0x16   :  { %532 = dma.done.wait [#allocation6], 256  }
  0x17   :  { %533 = vsyncadd [#allocation6], 4294967040 }
  0x18   :  { %534 = dma.done.wait [#allocation9], 576  }
  0x19   :  { %535 = vsyncadd [#allocation9], 4294966720 }
  0x1a   :  { %536 = dma.done.wait [#allocation12], 512  }
  0x1b   :  { %537 = vsyncadd [#allocation12], 4294966784  ;;  %vm130_vm0 = vcmask 1043456   ;;  %v125_v0 = vld [vmem:[#allocation8] sm:$0xf]  ;;  %v341_v1 = vld [vmem:[#allocation7] sm:$0xff] }
  0x1c   :  { %v121_v2 = vld [vmem:[#allocation5] sm:$0xff]  ;;  %v132_v3 = vsel %vm130_vm0, %v125_v0, 0  ;;  %vm126_vm1 = vcmask 64512   ;;  %v119_v5 = vld [vmem:[#allocation2] sm:$0xff]  ;;  %vm153_vm2 = vcmask 130048   ;;  %v345_v6 = vld [vmem:[#allocation10 + $0x18] sm:$0xff]  ;;  %164 = vmatpush.bf16.msra.mxu1 %v341_v1 }
  0x1d   :  { %v122_v4 = vpack.c.bf16 %v121_v2, %v121_v2  ;;  %141 = vmatpush.bf16.msra.mxu0 %v132_v3  ;;  %v120_v7 = vpack.c.bf16 %v119_v5, %v119_v5  ;;  %217 = vmatpush.bf16.msra.mxu2 %v345_v6  ;;  %v344_v8 = vld [vmem:[#allocation10 + $0x10] sm:$0xff]  ;;  %v343_v9 = vld [vmem:[#allocation10 + $0x8] sm:$0xff]  ;;  %v342_v10 = vld [vmem:[#allocation10] sm:$0xff]  ;;  %vm209_vm3 = vcmask 523264   ;;  %s548_s15 = smov [#allocation13]   ;;  %s288_s18 = sshll.u32 %s632_s8, 4  ;;  %s289_s18 = int_to_ptr.hbm [resolvable:$true] %s288_s18 }
  0x1e   :  { %v349_v11 = vld [vmem:[#allocation11 + $0x18] sm:$0xff]  ;;  %v348_v12 = vld [vmem:[#allocation11 + $0x10] sm:$0xff]  ;;  %v359_v13 = vld [vmem:[%s630_s6] ss:$0 sm:$0xff]  ;;  %s286_s16 = sshll.u32 %s548_s15, 4  ;;  %s287_s16 = int_to_ptr.vmem [resolvable:$true] %s286_s16 }
  0x1f   :  { %306 = vmatmul.msk.bf16.vlgmr.msra.gmra.mxu1 %vm153_vm2, %v120_v7  ;;  %271 = vmatpush.bf16.msra.mxu3 %v349_v11  ;;  %v347_v22 = vld [vmem:[#allocation11 + $0x8] sm:$0xff]  ;;  %v346_v23 = vld [vmem:[#allocation11] sm:$0xff] }
  0x20   :  { %301 = vmatmul.msk.bf16.vlgmr.msra.gmra.mxu0 %vm126_vm1, %v122_v4  ;;  %v360_v24 = vld [vmem:[%s630_s6 + $0x1] ss:$0 sm:$0xff]  ;;  %v361_v30 = vld [vmem:[%s631_s7] ss:$0 sm:$0xff] }
  0x21   :  { %218 = vmatpush.bf16.msra.mxu2 %v344_v8 }
  0x23   :  { %272 = vmatpush.bf16.msra.mxu3 %v348_v12 }
  0x25   :  { %219 = vmatpush.bf16.msra.mxu2 %v343_v9 }
  0x27   :  { %273 = vmatpush.bf16.msra.mxu3 %v347_v22 }
  0x29   :  { %220 = vmatpush.bf16.msra.mxu2 %v342_v10 }
  0x2b   :  { %274 = vmatpush.bf16.msra.mxu3 %v346_v23 }
  0x9c   :  { %v166_v15 = vpop.f32.mrf.mxu1 }
  0x9d   :  { %v143_v14 = vpop.f32.mrf.mxu0 }
  0x9e   :  { %v167_v16 = vadd.f32 %v166_v15, %v143_v14 }
  0xa0   :  { %v172_v17 = vadd.f32 %v359_v13, %v167_v16 }
  0xa2   :  { %v173_v18 = vmax.f32 %v172_v17, 0.0 }
  0xa4   :  { %v174_v19 = vpack.c.bf16 %v173_v18, %v173_v18  ;;  %v168_v21 = vpop.f32.mrf.mxu1 }
  0xa5   :  { %v145_v20 = vpop.f32.mrf.mxu0 }
  0xa6   :  { %323 = vmatmul.msk.bf16.vlgmr.msra.gmra.mxu2 %vm209_vm3, %v174_v19 }
 0x129   :  { %v222_v25 = vpop.f32.mrf.mxu2 }
 0x12a   :  { %v223_v26 = vadd.f32 %v360_v24, %v222_v25 }
 0x12c   :  { %v226_v27 = vmax.f32 %v223_v26, 0.0 }
 0x12e   :  { %v227_v28 = vpack.c.bf16 %v226_v27, %v226_v27 }
 0x130   :  { %340 = vmatmul.msk.bf16.vlgmr.msra.gmra.mxu3 %vm209_vm3, %v227_v28 }
 0x131   :  { %v224_v29 = vpop.f32.mrf.mxu2 }
 0x1b3   :  { %v276_v31 = vpop.f32.mrf.mxu3 }
 0x1b4   :  { %v277_v32 = vadd.f32 %v361_v30, %v276_v31 }
 0x1b6   :  { %280 = vst [vmem:[#allocation13] sm:$0xff] %v277_v32 }
 0x1b7   :  { %291 = dma.vmem_to_hbm [thread:$0]  %s287_s16, 128, %s289_s18, [#allocation4]  }
 0x1bb   :  { %v278_v33 = vpop.f32.mrf.mxu3 }
 0x1bc   :  { %538 = dma.done.wait [#allocation4], 128  }
 0x1bd   :  { %539 = vsyncadd [#allocation4], 4294967168 }
 0x1be   :  { %296 = vsyncpa [#allocation3], 1 }
 0x1bf   :  { %297 = vsyncpa [#allocation6], 1 }
 0x1c0   :  { %298 = vsyncpa [#allocation9], 1 }
 0x1c1   :  { %299 = vsyncpa [#allocation12], 1 }
 0x1c2   :  { %300 = vsyncpa [#allocation4], 1 }

</bundles_post_ra>
